<compile_context>
chip_gen: v7x
topology: tpu7x:2x2x1
jax: 0.10.0
libtpu: 0.0.40
codegen_flags: <defaults>
</compile_context>

<pallas_src>
import functools

import jax
import jax.numpy as jnp
from jax.experimental import pallas as pl
from jax.experimental.pallas import tpu as pltpu


# --------------------------------------------------------------------------
# Fused kernel
# --------------------------------------------------------------------------
def _spark_fused_kernel(x_ref, w1_ref, w2_ref, w3_ref, w4_ref, w5_ref, w6_ref,
                        out_ref, *, H, W, Cp, nalini):
    HW = H * W
    x = x_ref[0]                                            # (Cp, HW) f32

    # Lane-index helpers shared by all 3x3 convs (computed once).
    p = jax.lax.broadcasted_iota(jnp.int32, (Cp, HW), 1)    # flattened pixel id
    if (W & (W - 1)) == 0:
        col = jnp.bitwise_and(p, W - 1)                     # p % W (W power of 2)
    else:
        col = jax.lax.rem(p, jnp.int32(W))
    row_ge_1 = p >= W                                       # row >= 1
    row_le_hm2 = p < (H - 1) * W                            # row <= H-2
    col_ge_1 = col >= 1
    col_le_wm2 = col <= (W - 2)

    def act(a):
        if nalini:
            return (a + jnp.maximum((a - 1.0) * 0.5, 0.0)
                      + jnp.maximum((-a - 1.0) * 0.5, 0.0))
        return jnp.maximum(a, 0.0)

    def conv3x3(v, w_ref):
        # v: (Cp, HW).  Build im2col (9*Cp, HW) via masked rolls, one matmul.
        cols = []
        for dy in (-1, 0, 1):
            for dx in (-1, 0, 1):
                k = dy * W + dx
                s = v if k == 0 else pltpu.roll(v, shift=(-k) % HW, axis=1)
                valid = None
                for cond, use in ((row_ge_1, dy == -1), (row_le_hm2, dy == 1),
                                  (col_ge_1, dx == -1), (col_le_wm2, dx == 1)):
                    if use:
                        valid = cond if valid is None else jnp.logical_and(valid, cond)
                if valid is not None:
                    s = jnp.where(valid, s, 0.0)
                cols.append(s)
        xcat = jnp.concatenate(cols, axis=0)                # (9*Cp, HW)
        return jnp.dot(w_ref[...], xcat, preferred_element_type=jnp.float32)

    def conv1x1(v, w_ref):
        return jnp.dot(w_ref[...], v, preferred_element_type=jnp.float32)

    y = act(conv3x3(x, w1_ref))                             # relu(conv1(x))
    y = act(conv1x1(y, w2_ref))                             # relu(conv2(y))
    y = act(conv3x3(y, w3_ref))                             # relu(conv3(y))
    z = x + y                                               # residual
    z = act(conv3x3(z, w4_ref))                             # relu(conv4(z))
    z = act(conv1x1(z, w5_ref))                             # relu(conv5(z))
    out = conv3x3(z, w6_ref)                                # conv6 (no relu)

    out_ref[...] = out[0:1, :].reshape(1, 1, HW)            # channel 0 is real


# --------------------------------------------------------------------------
# Weight preprocessing (PyTorch OIHW -> padded, im2col-ordered matrices)
# --------------------------------------------------------------------------
def _prep_w3x3(w, Cp):
    # (cout, cin, 3, 3) -> (Cp, 9*Cp), column index = tap*Cp + cin
    cout, cin, kh, kw = w.shape
    wp = jnp.zeros((Cp, Cp, kh, kw), w.dtype).at[:cout, :cin].set(w)
    return jnp.transpose(wp, (0, 2, 3, 1)).reshape(Cp, kh * kw * Cp)


def _prep_w1x1(w, Cp):
    # (cout, cin, 1, 1) -> (Cp, Cp)
    cout, cin = w.shape[0], w.shape[1]
    return jnp.zeros((Cp, Cp), w.dtype).at[:cout, :cin].set(w[:, :, 0, 0])


# --------------------------------------------------------------------------
# Public forward (mirrors SPARK_Netv2.forward)
# --------------------------------------------------------------------------
@functools.partial(jax.jit, static_argnames=("acsx", "acsy", "nalini"))
def spark_netv2_forward(x_nchw, params, acsx, acsy, nalini=False):
    N, C0, H, W = x_nchw.shape
    HW = H * W
    Cp = max(8, ((C0 + 7) // 8) * 8)                        # pad channels to 8

    x = x_nchw.astype(jnp.float32)
    if C0 < Cp:
        x = jnp.pad(x, ((0, 0), (0, Cp - C0), (0, 0), (0, 0)))
    x_flat = x.reshape(N, Cp, HW)                           # lane-dense layout

    w1 = _prep_w3x3(params["conv1"], Cp)
    w2 = _prep_w1x1(params["conv2"], Cp)
    w3 = _prep_w3x3(params["conv3"], Cp)
    w4 = _prep_w3x3(params["conv4"], Cp)
    w5 = _prep_w1x1(params["conv5"], Cp)
    w6 = _prep_w3x3(params["conv6"], Cp)

    kern = functools.partial(_spark_fused_kernel, H=H, W=W, Cp=Cp, nalini=nalini)
    out_flat = pl.pallas_call(
        kern,
        out_shape=jax.ShapeDtypeStruct((N, 1, HW), jnp.float32),
        grid=(N,),
        in_specs=[
            pl.BlockSpec((1, Cp, HW), lambda b: (b, 0, 0)),
            pl.BlockSpec((Cp, 9 * Cp), lambda b: (0, 0)),
            pl.BlockSpec((Cp, Cp), lambda b: (0, 0)),
            pl.BlockSpec((Cp, 9 * Cp), lambda b: (0, 0)),
            pl.BlockSpec((Cp, 9 * Cp), lambda b: (0, 0)),
            pl.BlockSpec((Cp, Cp), lambda b: (0, 0)),
            pl.BlockSpec((Cp, 9 * Cp), lambda b: (0, 0)),
        ],
        out_specs=pl.BlockSpec((1, 1, HW), lambda b: (b, 0, 0)),
        compiler_params=pltpu.CompilerParams(dimension_semantics=("parallel",)),
    )(x_flat, w1, w2, w3, w4, w5, w6)

    out = out_flat.reshape(N, 1, H, W)
    # ACS crop (static slice) done in the wrapper — pure glue, no compute.
    loss_out = out[:, :, acsx[0]:acsx[-1] + 1, acsy[0]:acsy[-1] + 1]
    return out, loss_out


# --------------------------------------------------------------------------
# Pure-JAX reference (semantics of the PyTorch forward) for validation
# --------------------------------------------------------------------------
def _ref_forward(x, params, acsx, acsy):
    def conv(v, w, pad):
        return jax.lax.conv_general_dilated(
            v, w, window_strides=(1, 1), padding=[(pad, pad), (pad, pad)],
            dimension_numbers=("NCHW", "OIHW", "NCHW"),
            precision=jax.lax.Precision.HIGHEST)
    relu = jax.nn.relu
    y = relu(conv(x, params["conv1"], 1))
    y = relu(conv(y, params["conv2"], 0))
    y = relu(conv(y, params["conv3"], 1))
    z = x + y
    z = relu(conv(z, params["conv4"], 1))
    z = relu(conv(z, params["conv5"], 0))
    out = conv(z, params["conv6"], 1)
    loss = out[:, :, acsx[0]:acsx[-1] + 1, acsy[0]:acsy[-1] + 1]
    return out, loss


# --------------------------------------------------------------------------
if __name__ == "__main__":
    coils, ksize = 4, 3
    N, H, W = 2, 16, 16
    acsx = tuple(range(5, 12))   # ACS region rows 5..11
    acsy = tuple(range(3, 13))   # ACS region cols 3..12

    key = jax.random.PRNGKey(0)
    keys = jax.random.split(key, 7)

    def init_w(k, cout, cin, ksz):
        fan_in = cin * ksz * ksz
        return (jax.random.normal(k, (cout, cin, ksz, ksz), jnp.float32)
                * jnp.sqrt(2.0 / fan_in))

    params = {
        "conv1": init_w(keys[0], coils * 2, coils * 2, ksize),
        "conv2": init_w(keys[1], coils, coils * 2, 1),
        "conv3": init_w(keys[2], coils * 2, coils, ksize),
        "conv4": init_w(keys[3], coils, coils * 2, ksize),
        "conv5": init_w(keys[4], coils // 4, coils, 1),
        "conv6": init_w(keys[5], 1, coils // 4, ksize),
    }
    x = jax.random.normal(keys[6], (N, coils * 2, H, W), jnp.float32)

    out, loss_out = spark_netv2_forward(x, params, acsx, acsy)
    jax.block_until_ready((out, loss_out))

    ref_out, ref_loss = _ref_forward(x, params, acsx, acsy)
    assert out.shape == (N, 1, H, W)
    assert loss_out.shape == (N, 1, len(acsx), len(acsy))
    assert jnp.allclose(out, ref_out, atol=2e-2, rtol=2e-2)
    assert jnp.allclose(loss_out, ref_loss, atol=2e-2, rtol=2e-2)
    print("KERNEL_OK")
</pallas_src>

<mosaic_0001>
module attributes {stable_mosaic.version = 11 : i64} {
  func.func @_spark_fused_kernel(%arg0: i32, %arg1: memref<1x8x256xf32, #tpu.memory_space<vmem>>, %arg2: memref<8x72xf32, #tpu.memory_space<vmem>>, %arg3: memref<8x8xf32, #tpu.memory_space<vmem>>, %arg4: memref<8x72xf32, #tpu.memory_space<vmem>>, %arg5: memref<8x72xf32, #tpu.memory_space<vmem>>, %arg6: memref<8x8xf32, #tpu.memory_space<vmem>>, %arg7: memref<8x72xf32, #tpu.memory_space<vmem>>, %arg8: memref<1x1x256xf32, #tpu.memory_space<vmem>>) attributes {dimension_semantics = [#tpu.dimension_semantics<parallel>], iteration_bounds = array<i64: 2>, scalar_prefetch = 0 : i64, scratch_operands = 0 : i64, tpu.core_type = #tpu.core_type<tc>, window_params = [{transform_indices = @transform_0, window_bounds = array<i64: 1, 8, 256>}, {pipeline_mode = #tpu.pipeline_mode<synchronous>, transform_indices = @transform_1, window_bounds = array<i64: 8, 72>}, {pipeline_mode = #tpu.pipeline_mode<synchronous>, transform_indices = @transform_2, window_bounds = array<i64: 8, 8>}, {pipeline_mode = #tpu.pipeline_mode<synchronous>, transform_indices = @transform_3, window_bounds = array<i64: 8, 72>}, {pipeline_mode = #tpu.pipeline_mode<synchronous>, transform_indices = @transform_4, window_bounds = array<i64: 8, 72>}, {pipeline_mode = #tpu.pipeline_mode<synchronous>, transform_indices = @transform_5, window_bounds = array<i64: 8, 8>}, {pipeline_mode = #tpu.pipeline_mode<synchronous>, transform_indices = @transform_6, window_bounds = array<i64: 8, 72>}, {transform_indices = @transform_7, window_bounds = array<i64: 1, 1, 256>}]} {
    %c0 = arith.constant 0 : index
    %c0_0 = arith.constant 0 : index
    %c0_1 = arith.constant 0 : index
    %0 = vector.load %arg1[%c0, %c0_0, %c0_1] : memref<1x8x256xf32, #tpu.memory_space<vmem>>, vector<1x8x256xf32>
    %1 = vector.shape_cast %0 : vector<1x8x256xf32> to vector<8x256xf32>
    %2 = tpu.iota {dimensions = array<i32: 1>} : vector<8x256xi32>
    %c15_i32 = arith.constant 15 : i32
    %3 = vector.broadcast %c15_i32 : i32 to vector<8x256xi32>
    %4 = arith.andi %2, %3 : vector<8x256xi32>
    %c16_i32 = arith.constant 16 : i32
    %5 = vector.broadcast %c16_i32 : i32 to vector<8x256xi32>
    %6 = arith.cmpi sge, %2, %5 : vector<8x256xi32>
    %c240_i32 = arith.constant 240 : i32
    %7 = vector.broadcast %c240_i32 : i32 to vector<8x256xi32>
    %8 = arith.cmpi slt, %2, %7 : vector<8x256xi32>
    %c1_i32 = arith.constant 1 : i32
    %9 = vector.broadcast %c1_i32 : i32 to vector<8x256xi32>
    %10 = arith.cmpi sge, %4, %9 : vector<8x256xi32>
    %c14_i32 = arith.constant 14 : i32
    %11 = vector.broadcast %c14_i32 : i32 to vector<8x256xi32>
    %12 = arith.cmpi sle, %4, %11 : vector<8x256xi32>
    %c17_i32 = arith.constant 17 : i32
    %13 = tpu.dynamic_rotate %1 by %c17_i32 dim 1 : vector<8x256xf32>, i32 -> vector<8x256xf32>
    %14 = arith.andi %6, %10 : vector<8x256xi1>
    %cst = arith.constant 0.000000e+00 : f32
    %15 = vector.broadcast %cst : f32 to vector<8x256xf32>
    %16 = arith.select %14, %13, %15 : vector<8x256xi1>, vector<8x256xf32>
    %c16_i32_2 = arith.constant 16 : i32
    %17 = tpu.dynamic_rotate %1 by %c16_i32_2 dim 1 : vector<8x256xf32>, i32 -> vector<8x256xf32>
    %cst_3 = arith.constant 0.000000e+00 : f32
    %18 = vector.broadcast %cst_3 : f32 to vector<8x256xf32>
    %19 = arith.select %6, %17, %18 : vector<8x256xi1>, vector<8x256xf32>
    %c15_i32_4 = arith.constant 15 : i32
    %20 = tpu.dynamic_rotate %1 by %c15_i32_4 dim 1 : vector<8x256xf32>, i32 -> vector<8x256xf32>
    %21 = arith.andi %6, %12 : vector<8x256xi1>
    %cst_5 = arith.constant 0.000000e+00 : f32
    %22 = vector.broadcast %cst_5 : f32 to vector<8x256xf32>
    %23 = arith.select %21, %20, %22 : vector<8x256xi1>, vector<8x256xf32>
    %c1_i32_6 = arith.constant 1 : i32
    %24 = tpu.dynamic_rotate %1 by %c1_i32_6 dim 1 : vector<8x256xf32>, i32 -> vector<8x256xf32>
    %cst_7 = arith.constant 0.000000e+00 : f32
    %25 = vector.broadcast %cst_7 : f32 to vector<8x256xf32>
    %26 = arith.select %10, %24, %25 : vector<8x256xi1>, vector<8x256xf32>
    %c255_i32 = arith.constant 255 : i32
    %27 = tpu.dynamic_rotate %1 by %c255_i32 dim 1 : vector<8x256xf32>, i32 -> vector<8x256xf32>
    %cst_8 = arith.constant 0.000000e+00 : f32
    %28 = vector.broadcast %cst_8 : f32 to vector<8x256xf32>
    %29 = arith.select %12, %27, %28 : vector<8x256xi1>, vector<8x256xf32>
    %c241_i32 = arith.constant 241 : i32
    %30 = tpu.dynamic_rotate %1 by %c241_i32 dim 1 : vector<8x256xf32>, i32 -> vector<8x256xf32>
    %31 = arith.andi %8, %10 : vector<8x256xi1>
    %cst_9 = arith.constant 0.000000e+00 : f32
    %32 = vector.broadcast %cst_9 : f32 to vector<8x256xf32>
    %33 = arith.select %31, %30, %32 : vector<8x256xi1>, vector<8x256xf32>
    %c240_i32_10 = arith.constant 240 : i32
    %34 = tpu.dynamic_rotate %1 by %c240_i32_10 dim 1 : vector<8x256xf32>, i32 -> vector<8x256xf32>
    %cst_11 = arith.constant 0.000000e+00 : f32
    %35 = vector.broadcast %cst_11 : f32 to vector<8x256xf32>
    %36 = arith.select %8, %34, %35 : vector<8x256xi1>, vector<8x256xf32>
    %c239_i32 = arith.constant 239 : i32
    %37 = tpu.dynamic_rotate %1 by %c239_i32 dim 1 : vector<8x256xf32>, i32 -> vector<8x256xf32>
    %38 = arith.andi %8, %12 : vector<8x256xi1>
    %cst_12 = arith.constant 0.000000e+00 : f32
    %39 = vector.broadcast %cst_12 : f32 to vector<8x256xf32>
    %40 = arith.select %38, %37, %39 : vector<8x256xi1>, vector<8x256xf32>
    %41 = tpu.concatenate %16, %19, %23, %26, %1, %29, %33, %36, %40 in 0 : vector<8x256xf32>, vector<8x256xf32>, vector<8x256xf32>, vector<8x256xf32>, vector<8x256xf32>, vector<8x256xf32>, vector<8x256xf32>, vector<8x256xf32>, vector<8x256xf32> -> vector<72x256xf32>
    %c0_13 = arith.constant 0 : index
    %c0_14 = arith.constant 0 : index
    %42 = vector.load %arg2[%c0_13, %c0_14] : memref<8x72xf32, #tpu.memory_space<vmem>>, vector<8x72xf32>
    %cst_15 = arith.constant dense<0.000000e+00> : vector<8x256xf32>
    %43 = tpu.matmul %42, %41, %cst_15 {dimension_numbers = #tpu.dot_dimension_numbers<[1], [0], [0], [1], [0, 0, 1, 1], [], []>} : vector<8x72xf32>, vector<72x256xf32>, vector<8x256xf32> -> vector<8x256xf32>
    %cst_16 = arith.constant 0.000000e+00 : f32
    %44 = vector.broadcast %cst_16 : f32 to vector<8x256xf32>
    %45 = arith.maximumf %43, %44 : vector<8x256xf32>
    %c0_17 = arith.constant 0 : index
    %c0_18 = arith.constant 0 : index
    %46 = vector.load %arg3[%c0_17, %c0_18] : memref<8x8xf32, #tpu.memory_space<vmem>>, vector<8x8xf32>
    %cst_19 = arith.constant dense<0.000000e+00> : vector<8x256xf32>
    %47 = tpu.matmul %46, %45, %cst_19 {dimension_numbers = #tpu.dot_dimension_numbers<[1], [0], [0], [1], [0, 0, 1, 1], [], []>} : vector<8x8xf32>, vector<8x256xf32>, vector<8x256xf32> -> vector<8x256xf32>
    %cst_20 = arith.constant 0.000000e+00 : f32
    %48 = vector.broadcast %cst_20 : f32 to vector<8x256xf32>
    %49 = arith.maximumf %47, %48 : vector<8x256xf32>
    %c17_i32_21 = arith.constant 17 : i32
    %50 = tpu.dynamic_rotate %49 by %c17_i32_21 dim 1 : vector<8x256xf32>, i32 -> vector<8x256xf32>
    %51 = arith.andi %6, %10 : vector<8x256xi1>
    %cst_22 = arith.constant 0.000000e+00 : f32
    %52 = vector.broadcast %cst_22 : f32 to vector<8x256xf32>
    %53 = arith.select %51, %50, %52 : vector<8x256xi1>, vector<8x256xf32>
    %c16_i32_23 = arith.constant 16 : i32
    %54 = tpu.dynamic_rotate %49 by %c16_i32_23 dim 1 : vector<8x256xf32>, i32 -> vector<8x256xf32>
    %cst_24 = arith.constant 0.000000e+00 : f32
    %55 = vector.broadcast %cst_24 : f32 to vector<8x256xf32>
    %56 = arith.select %6, %54, %55 : vector<8x256xi1>, vector<8x256xf32>
    %c15_i32_25 = arith.constant 15 : i32
    %57 = tpu.dynamic_rotate %49 by %c15_i32_25 dim 1 : vector<8x256xf32>, i32 -> vector<8x256xf32>
    %58 = arith.andi %6, %12 : vector<8x256xi1>
    %cst_26 = arith.constant 0.000000e+00 : f32
    %59 = vector.broadcast %cst_26 : f32 to vector<8x256xf32>
    %60 = arith.select %58, %57, %59 : vector<8x256xi1>, vector<8x256xf32>
    %c1_i32_27 = arith.constant 1 : i32
    %61 = tpu.dynamic_rotate %49 by %c1_i32_27 dim 1 : vector<8x256xf32>, i32 -> vector<8x256xf32>
    %cst_28 = arith.constant 0.000000e+00 : f32
    %62 = vector.broadcast %cst_28 : f32 to vector<8x256xf32>
    %63 = arith.select %10, %61, %62 : vector<8x256xi1>, vector<8x256xf32>
    %c255_i32_29 = arith.constant 255 : i32
    %64 = tpu.dynamic_rotate %49 by %c255_i32_29 dim 1 : vector<8x256xf32>, i32 -> vector<8x256xf32>
    %cst_30 = arith.constant 0.000000e+00 : f32
    %65 = vector.broadcast %cst_30 : f32 to vector<8x256xf32>
    %66 = arith.select %12, %64, %65 : vector<8x256xi1>, vector<8x256xf32>
    %c241_i32_31 = arith.constant 241 : i32
    %67 = tpu.dynamic_rotate %49 by %c241_i32_31 dim 1 : vector<8x256xf32>, i32 -> vector<8x256xf32>
    %68 = arith.andi %8, %10 : vector<8x256xi1>
    %cst_32 = arith.constant 0.000000e+00 : f32
    %69 = vector.broadcast %cst_32 : f32 to vector<8x256xf32>
    %70 = arith.select %68, %67, %69 : vector<8x256xi1>, vector<8x256xf32>
    %c240_i32_33 = arith.constant 240 : i32
    %71 = tpu.dynamic_rotate %49 by %c240_i32_33 dim 1 : vector<8x256xf32>, i32 -> vector<8x256xf32>
    %cst_34 = arith.constant 0.000000e+00 : f32
    %72 = vector.broadcast %cst_34 : f32 to vector<8x256xf32>
    %73 = arith.select %8, %71, %72 : vector<8x256xi1>, vector<8x256xf32>
    %c239_i32_35 = arith.constant 239 : i32
    %74 = tpu.dynamic_rotate %49 by %c239_i32_35 dim 1 : vector<8x256xf32>, i32 -> vector<8x256xf32>
    %75 = arith.andi %8, %12 : vector<8x256xi1>
    %cst_36 = arith.constant 0.000000e+00 : f32
    %76 = vector.broadcast %cst_36 : f32 to vector<8x256xf32>
    %77 = arith.select %75, %74, %76 : vector<8x256xi1>, vector<8x256xf32>
    %78 = tpu.concatenate %53, %56, %60, %63, %49, %66, %70, %73, %77 in 0 : vector<8x256xf32>, vector<8x256xf32>, vector<8x256xf32>, vector<8x256xf32>, vector<8x256xf32>, vector<8x256xf32>, vector<8x256xf32>, vector<8x256xf32>, vector<8x256xf32> -> vector<72x256xf32>
    %c0_37 = arith.constant 0 : index
    %c0_38 = arith.constant 0 : index
    %79 = vector.load %arg4[%c0_37, %c0_38] : memref<8x72xf32, #tpu.memory_space<vmem>>, vector<8x72xf32>
    %cst_39 = arith.constant dense<0.000000e+00> : vector<8x256xf32>
    %80 = tpu.matmul %79, %78, %cst_39 {dimension_numbers = #tpu.dot_dimension_numbers<[1], [0], [0], [1], [0, 0, 1, 1], [], []>} : vector<8x72xf32>, vector<72x256xf32>, vector<8x256xf32> -> vector<8x256xf32>
    %cst_40 = arith.constant 0.000000e+00 : f32
    %81 = vector.broadcast %cst_40 : f32 to vector<8x256xf32>
    %82 = arith.maximumf %80, %81 : vector<8x256xf32>
    %83 = arith.addf %1, %82 : vector<8x256xf32>
    %c17_i32_41 = arith.constant 17 : i32
    %84 = tpu.dynamic_rotate %83 by %c17_i32_41 dim 1 : vector<8x256xf32>, i32 -> vector<8x256xf32>
    %85 = arith.andi %6, %10 : vector<8x256xi1>
    %cst_42 = arith.constant 0.000000e+00 : f32
    %86 = vector.broadcast %cst_42 : f32 to vector<8x256xf32>
    %87 = arith.select %85, %84, %86 : vector<8x256xi1>, vector<8x256xf32>
    %c16_i32_43 = arith.constant 16 : i32
    %88 = tpu.dynamic_rotate %83 by %c16_i32_43 dim 1 : vector<8x256xf32>, i32 -> vector<8x256xf32>
    %cst_44 = arith.constant 0.000000e+00 : f32
    %89 = vector.broadcast %cst_44 : f32 to vector<8x256xf32>
    %90 = arith.select %6, %88, %89 : vector<8x256xi1>, vector<8x256xf32>
    %c15_i32_45 = arith.constant 15 : i32
    %91 = tpu.dynamic_rotate %83 by %c15_i32_45 dim 1 : vector<8x256xf32>, i32 -> vector<8x256xf32>
    %92 = arith.andi %6, %12 : vector<8x256xi1>
    %cst_46 = arith.constant 0.000000e+00 : f32
    %93 = vector.broadcast %cst_46 : f32 to vector<8x256xf32>
    %94 = arith.select %92, %91, %93 : vector<8x256xi1>, vector<8x256xf32>
    %c1_i32_47 = arith.constant 1 : i32
    %95 = tpu.dynamic_rotate %83 by %c1_i32_47 dim 1 : vector<8x256xf32>, i32 -> vector<8x256xf32>
    %cst_48 = arith.constant 0.000000e+00 : f32
    %96 = vector.broadcast %cst_48 : f32 to vector<8x256xf32>
    %97 = arith.select %10, %95, %96 : vector<8x256xi1>, vector<8x256xf32>
    %c255_i32_49 = arith.constant 255 : i32
    %98 = tpu.dynamic_rotate %83 by %c255_i32_49 dim 1 : vector<8x256xf32>, i32 -> vector<8x256xf32>
    %cst_50 = arith.constant 0.000000e+00 : f32
    %99 = vector.broadcast %cst_50 : f32 to vector<8x256xf32>
    %100 = arith.select %12, %98, %99 : vector<8x256xi1>, vector<8x256xf32>
    %c241_i32_51 = arith.constant 241 : i32
    %101 = tpu.dynamic_rotate %83 by %c241_i32_51 dim 1 : vector<8x256xf32>, i32 -> vector<8x256xf32>
    %102 = arith.andi %8, %10 : vector<8x256xi1>
    %cst_52 = arith.constant 0.000000e+00 : f32
    %103 = vector.broadcast %cst_52 : f32 to vector<8x256xf32>
    %104 = arith.select %102, %101, %103 : vector<8x256xi1>, vector<8x256xf32>
    %c240_i32_53 = arith.constant 240 : i32
    %105 = tpu.dynamic_rotate %83 by %c240_i32_53 dim 1 : vector<8x256xf32>, i32 -> vector<8x256xf32>
    %cst_54 = arith.constant 0.000000e+00 : f32
    %106 = vector.broadcast %cst_54 : f32 to vector<8x256xf32>
    %107 = arith.select %8, %105, %106 : vector<8x256xi1>, vector<8x256xf32>
    %c239_i32_55 = arith.constant 239 : i32
    %108 = tpu.dynamic_rotate %83 by %c239_i32_55 dim 1 : vector<8x256xf32>, i32 -> vector<8x256xf32>
    %109 = arith.andi %8, %12 : vector<8x256xi1>
    %cst_56 = arith.constant 0.000000e+00 : f32
    %110 = vector.broadcast %cst_56 : f32 to vector<8x256xf32>
    %111 = arith.select %109, %108, %110 : vector<8x256xi1>, vector<8x256xf32>
    %112 = tpu.concatenate %87, %90, %94, %97, %83, %100, %104, %107, %111 in 0 : vector<8x256xf32>, vector<8x256xf32>, vector<8x256xf32>, vector<8x256xf32>, vector<8x256xf32>, vector<8x256xf32>, vector<8x256xf32>, vector<8x256xf32>, vector<8x256xf32> -> vector<72x256xf32>
    %c0_57 = arith.constant 0 : index
    %c0_58 = arith.constant 0 : index
    %113 = vector.load %arg5[%c0_57, %c0_58] : memref<8x72xf32, #tpu.memory_space<vmem>>, vector<8x72xf32>
    %cst_59 = arith.constant dense<0.000000e+00> : vector<8x256xf32>
    %114 = tpu.matmul %113, %112, %cst_59 {dimension_numbers = #tpu.dot_dimension_numbers<[1], [0], [0], [1], [0, 0, 1, 1], [], []>} : vector<8x72xf32>, vector<72x256xf32>, vector<8x256xf32> -> vector<8x256xf32>
    %cst_60 = arith.constant 0.000000e+00 : f32
    %115 = vector.broadcast %cst_60 : f32 to vector<8x256xf32>
    %116 = arith.maximumf %114, %115 : vector<8x256xf32>
    %c0_61 = arith.constant 0 : index
    %c0_62 = arith.constant 0 : index
    %117 = vector.load %arg6[%c0_61, %c0_62] : memref<8x8xf32, #tpu.memory_space<vmem>>, vector<8x8xf32>
    %cst_63 = arith.constant dense<0.000000e+00> : vector<8x256xf32>
    %118 = tpu.matmul %117, %116, %cst_63 {dimension_numbers = #tpu.dot_dimension_numbers<[1], [0], [0], [1], [0, 0, 1, 1], [], []>} : vector<8x8xf32>, vector<8x256xf32>, vector<8x256xf32> -> vector<8x256xf32>
    %cst_64 = arith.constant 0.000000e+00 : f32
    %119 = vector.broadcast %cst_64 : f32 to vector<8x256xf32>
    %120 = arith.maximumf %118, %119 : vector<8x256xf32>
    %c17_i32_65 = arith.constant 17 : i32
    %121 = tpu.dynamic_rotate %120 by %c17_i32_65 dim 1 : vector<8x256xf32>, i32 -> vector<8x256xf32>
    %122 = arith.andi %6, %10 : vector<8x256xi1>
    %cst_66 = arith.constant 0.000000e+00 : f32
    %123 = vector.broadcast %cst_66 : f32 to vector<8x256xf32>
    %124 = arith.select %122, %121, %123 : vector<8x256xi1>, vector<8x256xf32>
    %c16_i32_67 = arith.constant 16 : i32
    %125 = tpu.dynamic_rotate %120 by %c16_i32_67 dim 1 : vector<8x256xf32>, i32 -> vector<8x256xf32>
    %cst_68 = arith.constant 0.000000e+00 : f32
    %126 = vector.broadcast %cst_68 : f32 to vector<8x256xf32>
    %127 = arith.select %6, %125, %126 : vector<8x256xi1>, vector<8x256xf32>
    %c15_i32_69 = arith.constant 15 : i32
    %128 = tpu.dynamic_rotate %120 by %c15_i32_69 dim 1 : vector<8x256xf32>, i32 -> vector<8x256xf32>
    %129 = arith.andi %6, %12 : vector<8x256xi1>
    %cst_70 = arith.constant 0.000000e+00 : f32
    %130 = vector.broadcast %cst_70 : f32 to vector<8x256xf32>
    %131 = arith.select %129, %128, %130 : vector<8x256xi1>, vector<8x256xf32>
    %c1_i32_71 = arith.constant 1 : i32
    %132 = tpu.dynamic_rotate %120 by %c1_i32_71 dim 1 : vector<8x256xf32>, i32 -> vector<8x256xf32>
    %cst_72 = arith.constant 0.000000e+00 : f32
    %133 = vector.broadcast %cst_72 : f32 to vector<8x256xf32>
    %134 = arith.select %10, %132, %133 : vector<8x256xi1>, vector<8x256xf32>
    %c255_i32_73 = arith.constant 255 : i32
    %135 = tpu.dynamic_rotate %120 by %c255_i32_73 dim 1 : vector<8x256xf32>, i32 -> vector<8x256xf32>
    %cst_74 = arith.constant 0.000000e+00 : f32
    %136 = vector.broadcast %cst_74 : f32 to vector<8x256xf32>
    %137 = arith.select %12, %135, %136 : vector<8x256xi1>, vector<8x256xf32>
    %c241_i32_75 = arith.constant 241 : i32
    %138 = tpu.dynamic_rotate %120 by %c241_i32_75 dim 1 : vector<8x256xf32>, i32 -> vector<8x256xf32>
    %139 = arith.andi %8, %10 : vector<8x256xi1>
    %cst_76 = arith.constant 0.000000e+00 : f32
    %140 = vector.broadcast %cst_76 : f32 to vector<8x256xf32>
    %141 = arith.select %139, %138, %140 : vector<8x256xi1>, vector<8x256xf32>
    %c240_i32_77 = arith.constant 240 : i32
    %142 = tpu.dynamic_rotate %120 by %c240_i32_77 dim 1 : vector<8x256xf32>, i32 -> vector<8x256xf32>
    %cst_78 = arith.constant 0.000000e+00 : f32
    %143 = vector.broadcast %cst_78 : f32 to vector<8x256xf32>
    %144 = arith.select %8, %142, %143 : vector<8x256xi1>, vector<8x256xf32>
    %c239_i32_79 = arith.constant 239 : i32
    %145 = tpu.dynamic_rotate %120 by %c239_i32_79 dim 1 : vector<8x256xf32>, i32 -> vector<8x256xf32>
    %146 = arith.andi %8, %12 : vector<8x256xi1>
    %cst_80 = arith.constant 0.000000e+00 : f32
    %147 = vector.broadcast %cst_80 : f32 to vector<8x256xf32>
    %148 = arith.select %146, %145, %147 : vector<8x256xi1>, vector<8x256xf32>
    %149 = tpu.concatenate %124, %127, %131, %134, %120, %137, %141, %144, %148 in 0 : vector<8x256xf32>, vector<8x256xf32>, vector<8x256xf32>, vector<8x256xf32>, vector<8x256xf32>, vector<8x256xf32>, vector<8x256xf32>, vector<8x256xf32>, vector<8x256xf32> -> vector<72x256xf32>
    %c0_81 = arith.constant 0 : index
    %c0_82 = arith.constant 0 : index
    %150 = vector.load %arg7[%c0_81, %c0_82] : memref<8x72xf32, #tpu.memory_space<vmem>>, vector<8x72xf32>
    %cst_83 = arith.constant dense<0.000000e+00> : vector<8x256xf32>
    %151 = tpu.matmul %150, %149, %cst_83 {dimension_numbers = #tpu.dot_dimension_numbers<[1], [0], [0], [1], [0, 0, 1, 1], [], []>} : vector<8x72xf32>, vector<72x256xf32>, vector<8x256xf32> -> vector<8x256xf32>
    %152 = vector.extract_strided_slice %151 {offsets = [0, 0], sizes = [1, 256], strides = [1, 1]} : vector<8x256xf32> to vector<1x256xf32>
    %153 = vector.shape_cast %152 : vector<1x256xf32> to vector<1x1x256xf32>
    %c0_84 = arith.constant 0 : index
    %c0_85 = arith.constant 0 : index
    %c0_86 = arith.constant 0 : index
    %154 = vector.load %arg8[%c0_84, %c0_85, %c0_86] : memref<1x1x256xf32, #tpu.memory_space<vmem>>, vector<1x1x256xf32>
    tpu.vector_store %arg8[%c0_84, %c0_85, %c0_86], %153 {strides = array<i32>} : memref<1x1x256xf32, #tpu.memory_space<vmem>>, vector<1x1x256xf32>,
    return
  }
  func.func @transform_0(%arg0: i32) -> (i32, i32, i32) {
    %c0_i32 = arith.constant 0 : i32
    %c0_i32_0 = arith.constant 0 : i32
    %c0_i32_1 = arith.constant 0 : i32
    return %arg0, %c0_i32, %c0_i32_0 : i32, i32, i32
  }
  func.func @transform_1(%arg0: i32) -> (i32, i32) {
    %c0_i32 = arith.constant 0 : i32
    %c0_i32_0 = arith.constant 0 : i32
    %c0_i32_1 = arith.constant 0 : i32
    return %c0_i32, %c0_i32_0 : i32, i32
  }
  func.func @transform_2(%arg0: i32) -> (i32, i32) {
    %c0_i32 = arith.constant 0 : i32
    %c0_i32_0 = arith.constant 0 : i32
    %c0_i32_1 = arith.constant 0 : i32
    return %c0_i32, %c0_i32_0 : i32, i32
  }
  func.func @transform_3(%arg0: i32) -> (i32, i32) {
    %c0_i32 = arith.constant 0 : i32
    %c0_i32_0 = arith.constant 0 : i32
    %c0_i32_1 = arith.constant 0 : i32
    return %c0_i32, %c0_i32_0 : i32, i32
  }
  func.func @transform_4(%arg0: i32) -> (i32, i32) {
    %c0_i32 = arith.constant 0 : i32
    %c0_i32_0 = arith.constant 0 : i32
    %c0_i32_1 = arith.constant 0 : i32
    return %c0_i32, %c0_i32_0 : i32, i32
  }
  func.func @transform_5(%arg0: i32) -> (i32, i32) {
    %c0_i32 = arith.constant 0 : i32
    %c0_i32_0 = arith.constant 0 : i32
    %c0_i32_1 = arith.constant 0 : i32
    return %c0_i32, %c0_i32_0 : i32, i32
  }
  func.func @transform_6(%arg0: i32) -> (i32, i32) {
    %c0_i32 = arith.constant 0 : i32
    %c0_i32_0 = arith.constant 0 : i32
    %c0_i32_1 = arith.constant 0 : i32
    return %c0_i32, %c0_i32_0 : i32, i32
  }
  func.func @transform_7(%arg0: i32) -> (i32, i32, i32) {
    %c0_i32 = arith.constant 0 : i32
    %c0_i32_0 = arith.constant 0 : i32
    %c0_i32_1 = arith.constant 0 : i32
    return %arg0, %c0_i32, %c0_i32_0 : i32, i32, i32
  }
}

</mosaic_0001>

<bundles_post_ra>
// kernel: spark_netv2_forward.1
= control target key start
LH: loop header
LB: loop body
LE: loop exit
PB: predicated region body
PF: predicated region fallthrough
CT: control target
= control target key end

     0   :  { %s1491_s24 = smov 0   ;;  %s1914_s0 = inlined_call_operand.vmem [shape: f32[2,8,256], index: 0, kind: input, shape index: {}]   ;;  %s1915_s1 = inlined_call_operand.vmem [shape: f32[8,72], index: 1, kind: input, shape index: {}]   ;;  %s1916_s2 = inlined_call_operand.vmem [shape: f32[8,8], index: 2, kind: input, shape index: {}]   ;;  %s1917_s3 = inlined_call_operand.vmem [shape: f32[8,72], index: 3, kind: input, shape index: {}]   ;;  %s1918_s4 = inlined_call_operand.vmem [shape: f32[8,72], index: 4, kind: input, shape index: {}]   ;;  %s1919_s5 = inlined_call_operand.vmem [shape: f32[8,8], index: 5, kind: input, shape index: {}]   ;;  %s1920_s6 = inlined_call_operand.vmem [shape: f32[8,72], index: 6, kind: input, shape index: {}]   ;;  %s1921_s7 = inlined_call_operand.vmem [shape: f32[2,1,256], index: 7, kind: output, shape index: {}]  }
   0x1 LB: > { %s1104_s25 = sadd.s32 4294967295, %s1438_s24   ;;  %p1108_p0 = scmp.ge.s32.totalorder %s1438_s24, 1  ;;  %s1438_s24 = sphi %s1491_s24, %s17_s24  }
   0x2   : > { %p237_p1 = scmp.lt.s32.totalorder %s1438_s24, 3 }
   0x4   : > { %p238_p2 = pnand %p1108_p0, %p237_p1 }
   0x5   : > { %p268_p3 = scmp.lt.s32.totalorder (!%p238_p2), %s1104_s25, 1  ;;  %s1440_s30 = smov (!%p238_p2), 15   ;;  %v1448_v3 = vmov (!%p238_p2), 0.0   ;;  %v279_v4 = vlaneseq (!%p238_p2)  ;;  %vm1449_vm9 = vmmov (!%p238_p2), 1   ;;  %v450_v16 = vld [vmem:[%s1916_s2] sm:$0xff] (!%p238_p2) }
   0x6   : > { %241 = sbr.rel (%p238_p2) target bundleno = 1882 (0x75a), region = 48  ;;  %s1441_s8 = smov (!%p238_p2), 17   ;;  %441 = vmatprep.mubr.f32.mxu0 (!%p238_p2), %v1448_v3  ;;  %660 = vmatprep.mubr.f32.mxu1 (!%p238_p2), %v1448_v3  ;;  %v953_v61 = vld [vmem:[%s1920_s6] sm:$0xff] (!%p238_p2)  ;;  %v1450_v62 = vmov (!%p238_p2), 1966171168  }
   0x7   : > { %s1442_s9 = smov (!%p238_p2), 1   ;;  %s1443_s10 = smov (!%p238_p2), 16   ;;  %v1525_v5 = vand.u32 (!%p238_p2), 127, %v279_v4 }
   0x8   : > { %s1444_s11 = smov (!%p238_p2), 127   ;;  %s1445_s12 = smov (!%p238_p2), 113  }
   0x9   : > { %s1446_s13 = smov (!%p238_p2), 112   ;;  %s1447_s14 = smov (!%p238_p2), 111   ;;  %v1528_v6 = vadd.s32 (!%p238_p2), 128, %v1525_v5  ;;  %v282_v7 = vand.u32 (!%p238_p2), 15, %v1525_v5  ;;  %vm284_vm0 = vcmp.ge.s32.totalorder (!%p238_p2), %v1525_v5, 16  ;;  %vm1922_vm2 = vcmp.lt.s32.totalorder (!%p238_p2), %v1525_v5, 15 }
   0xa   : > { %vm1929_vm4 = vcmp.lt.s32.totalorder (!%p238_p2), %v1525_v5, 17  ;;  %vm1923_vm5 = vcmp.lt.s32.totalorder (!%p238_p2), %v1525_v5, 1  ;;  %vm1925_vm6 = vcmp.lt.s32.totalorder (!%p238_p2), %v1525_v5, 16  ;;  %vm1924_vm13 = vcmp.lt.s32.totalorder (!%p238_p2), %v1525_v5, 127 }
   0xb   : > { %v283_v8 = vand.u32 (!%p238_p2), 15, %v1528_v6  ;;  %vm1533_vm1 = vcmp.ge.s32.totalorder (!%p238_p2), %v282_v7, 1  ;;  %vm1568_vm11 = vcmp.le.s32.totalorder (!%p238_p2), %v282_v7, 14 }
   0xc   : > { %vm1549_vm7 = vmand (!%p238_p2), %vm284_vm0, %vm1533_vm1 }
   0xd   : > { %s2000_s25 = smov (!%p268_p3, %s1104_s25), 1  ;;  %vm1538_vm3 = vcmp.ge.s32.totalorder %v283_v8, 1  ;;  %vm1553_vm8 = vcmp.le.s32.totalorder %v283_v8, 14  ;;  %vm1584_vm12 = vmpackc.low %vm284_vm0, %vm1549_vm7  ;;  %vm1927_vm7 = vcmp.lt.s32.totalorder %v1525_v5, 113  ;;  %v1035_v8 = vshrl.u32 %v279_v4, 7 }
   0xe   : > { %s1176_s26 = sshll.u32 %s2000_s25, 4  ;;  %vm1564_vm10 = vmpackc.low %vm1449_vm9, %vm1538_vm3 }
   0xf   : > { %s272_s29 = scalar_lea.vmem %s1914_s0, %s1176_s26  ;;  %vm1593_vm14 = vmpackc.low %vm1538_vm3, %vm1553_vm8 }
  0x10   : > { %v1505_v0 = vld [vmem:[%s272_s29] sm:$0xff]  ;;  %v1507_v1 = vld [vmem:[%s272_s29 + $0x8] sm:$0xff]  ;;  %vm319_vm15 = vmand %vm284_vm0, %vm1568_vm11  ;;  %vm287_vm0 = vcmp.lt.s32.totalorder %v1528_v6, 240  ;;  %s1111_s29 = sshll.u32 %s2000_s25, 1 }
  0x11   : > { %v1302_v2 = vpack.i.bf16 %v1507_v1, %v1505_v0 }
  0x13   : > { %1303 = vrot.lane.b32.xlu1 %v1302_v2, %s1440_s30  ;;  %1293 = vrot.lane.b32.xlu0 %v1302_v2, %s1441_s8 }
  0x17   : > { %1308 = vrot.lane.b32.xlu1 %v1302_v2, %s1442_s9  ;;  %1298 = vrot.lane.b32.xlu0 %v1302_v2, %s1443_s10 }
  0x1b   : > { %1313 = vrot.lane.b32.xlu0 %v1302_v2, %s1444_s11  ;;  %1318 = vrot.lane.b32.xlu1 %v1302_v2, %s1445_s12 }
  0x1f   : > { %1323 = vrot.lane.b32.xlu0 %v1302_v2, %s1446_s13  ;;  %361 = vrot.lane.b32.xlu1 %v1505_v0, %s1447_s14 }
  0x23   : > { %363 = vrot.lane.b32.xlu0 %v1507_v1, %s1447_s14 }
  0x85   : > { %v1304_v9 = vpop.permute.xlu1 %1303  ;;  %v1294_v10 = vpop.permute.xlu0 %1293 }
  0x86   : > { %v1306_v12 = vunpack.i.h.bf16 %v1304_v9  ;;  %v1305_v13 = vunpack.i.l.bf16 %v1304_v9  ;;  %v1296_v14 = vunpack.i.h.bf16 %v1294_v10  ;;  %v1295_v15 = vunpack.i.l.bf16 %v1294_v10 }
  0x88   : > { %v317_v25 = vsel %vm1922_vm2, %v1305_v13, %v1306_v12  ;;  %v297_v26 = vsel %vm1929_vm4, %v1295_v15, %v1296_v14  ;;  %v298_v31 = vsel %vm1929_vm4, %v1296_v14, %v1295_v15  ;;  %v318_v43 = vsel %vm1922_vm2, %v1306_v12, %v1305_v13  ;;  %vm1620_vm2 = vmpackc.low %vm1533_vm1, %vm319_vm15  ;;  %v372_v12 = vld [vmem:[%s1915_s1] sm:$0xff] }
  0x89   : > { %v1309_v17 = vpop.permute.xlu1 %1308  ;;  %v1299_v18 = vpop.permute.xlu0 %1298  ;;  %vm349_vm15 = vmand %vm287_vm0, %vm1538_vm3 }
  0x8a   : > { %v1311_v21 = vunpack.i.h.bf16 %v1309_v17  ;;  %v1310_v22 = vunpack.i.l.bf16 %v1309_v17  ;;  %v1301_v23 = vunpack.i.h.bf16 %v1299_v18  ;;  %v1300_v24 = vunpack.i.l.bf16 %v1299_v18  ;;  %vm1652_vm3 = vmpackc.low %vm1568_vm11, %vm1449_vm9 }
  0x8c   : > { %v328_v29 = vsel %vm1923_vm5, %v1310_v22, %v1311_v21  ;;  %v308_v30 = vsel %vm1925_vm6, %v1300_v24, %v1301_v23  ;;  %v309_v32 = vsel %vm1925_vm6, %v1301_v23, %v1300_v24  ;;  %v329_v44 = vsel %vm1923_vm5, %v1311_v21, %v1310_v22  ;;  %vm1658_vm6 = vmpackc.low %vm287_vm0, %vm349_vm15 }
  0x8d   : > { %v1177_v34 = vpack.c.bf16 %v308_v30, %v297_v26  ;;  %v1180_v35 = vpack.c.bf16 %v309_v32, %v298_v31  ;;  %v1314_v36 = vpop.permute.xlu0 %1313  ;;  %v1319_v38 = vpop.permute.xlu1 %1318  ;;  %v1183_v45 = vpack.c.bf16 %v328_v29, %v317_v25  ;;  %vm1926_vm5 = vcmp.lt.s32.totalorder %v1525_v5, 112  ;;  %vm1680_vm15 = vmand %vm287_vm0, %vm1553_vm8 }
  0x8e   : > { %v1316_v39 = vunpack.i.h.bf16 %v1314_v36  ;;  %v1315_v40 = vunpack.i.l.bf16 %v1314_v36  ;;  %v1321_v41 = vunpack.i.h.bf16 %v1319_v38  ;;  %v1320_v42 = vunpack.i.l.bf16 %v1319_v38 }
  0x8f   : > { %1179 = vmatprep.subr.msk.bf16.mxu0 %vm1564_vm10, %v1177_v34  ;;  %v1186_v51 = vpack.c.bf16 %v329_v44, %v318_v43 }
  0x90   : > { %1182 = vmatpush1.bf16.msk.msra.mxu0 %vm1584_vm12, %v1180_v35  ;;  %v338_v46 = vsel %vm1924_vm13, %v1316_v39, %v1315_v40  ;;  %v337_v47 = vsel %vm1924_vm13, %v1315_v40, %v1316_v39  ;;  %v347_v52 = vsel %vm1927_vm7, %v1321_v41, %v1320_v42  ;;  %vm1630_vm13 = vmpackc.low %vm1553_vm8, %vm1449_vm9  ;;  %v346_v58 = vsel %vm1927_vm7, %v1320_v42, %v1321_v41 }
  0x91   : > { %v1189_v48 = vpack.c.bf16 %v338_v46, %v1507_v1  ;;  %1185 = vmatprep.subr.msk.bf16.mxu0 %vm1593_vm14, %v1183_v45  ;;  %v1324_v50 = vpop.permute.xlu0 %1323  ;;  %v1192_v56 = vpack.c.bf16 %v337_v47, %v1505_v0  ;;  %v362_v63 = vpop.permute.xlu1 %361  ;;  %vm1670_vm7 = vmpackc.low %vm1449_vm9, %vm1533_vm1  ;;  %vm373_vm1 = vcmask 588800   ;;  %vm1928_vm8 = vcmask 64512  }
  0x92   : > { %v1326_v53 = vunpack.i.h.bf16 %v1324_v50  ;;  %v1325_v54 = vunpack.i.l.bf16 %v1324_v50  ;;  %vm1958_vm9 = vcmp.lt.s32.totalorder %v1525_v5, 16 }
  0x93   : > { %vm1959_vm0 = vmmov %vm1958_vm9 }
  0x94   : > { %1188 = vmatpush1.bf16.msk.msra.mxu0 %vm1620_vm2, %v1186_v51  ;;  %v358_v57 = vsel %vm1926_vm5, %v1326_v53, %v1325_v54  ;;  %v357_v59 = vsel %vm1926_vm5, %v1325_v54, %v1326_v53  ;;  %vm365_vm5 = vcmp.lt.s32.totalorder %v1525_v5, 111 }
  0x95   : > { %v1195_v60 = vpack.c.bf16 %v358_v57, %v347_v52  ;;  %1191 = vmatprep.subr.msk.bf16.mxu0 %vm1630_vm13, %v1189_v48  ;;  %v364_v2 = vpop.permute.xlu0 %363  ;;  %v1198_v7 = vpack.c.bf16 %v357_v59, %v346_v58 }
  0x96   : > { %v367_v9 = vsel %vm365_vm5, %v364_v2, %v362_v63  ;;  %v366_v11 = vsel %vm365_vm5, %v362_v63, %v364_v2 }
  0x98   : > { %1194 = vmatpush1.bf16.msk.msra.mxu0 %vm1652_vm3, %v1192_v56 }
  0x99   : > { %1197 = vmatprep.subr.msk.bf16.mxu0 %vm1658_vm6, %v1195_v60 }
  0x9c   : > { %1200 = vmatpush1.bf16.msk.msra.mxu0 %vm1670_vm7, %v1198_v7 }
  0x9d   : > { %1124 = vmatprep.subr.msk.mxu0 %vm1680_vm15, %v367_v9 }
  0xa0   : > { %1125 = vmatpush1.msk.msra.mxu0 %vm1568_vm11, %v366_v11 }
  0xa1   : > { %1126 = vmatmul.mubr.msk.f32.vlgmr.msra.gmra.mrb[0].mxu0 %vm373_vm1, %v372_v12 }
  0xa2   : > { %519 = vmatprep.mubr.f32.mxu0 %v1448_v3 }
 0x174   : > { %v443_v6 = vpop.f32.mrb[0].mxu0 }
 0x175   : > { %v445_v13 = vpop.f32.mrb[1].mxu0  ;;  %v448_v15 = vmax.f32 %v443_v6, 0.0 }
 0x176   : > { %v449_v14 = vmax.f32 %v445_v13, 0.0 }
 0x178   : > { %455 = vmatprep.subr.mxu0 %v449_v14 }
 0x179   : > { %456 = vmatpush1.msra.mxu0 %v448_v15 }
 0x17a   : > { %1127 = vmatmul.mubr.msk.f32.vlgmr.msra.gmra.mrb[2].mxu0 %vm1928_vm8, %v450_v16  ;;  %vm1960_vm8 = vcmp.lt.s32.totalorder %v1525_v5, 1 }
 0x17b   : > { %803 = vmatprep.mubr.f32.mxu0 %v1448_v3 }
 0x24d   : > { %v521_v17 = vpop.f32.mrb[2].mxu0 }
 0x24e   : > { %v526_v18 = vmax.f32 %v521_v17, 0.0  ;;  %v523_v19 = vpop.f32.mrb[3].mxu0 }
 0x24f   : > { %v527_v20 = vmax.f32 %v523_v19, 0.0  ;;  %v592_v19 = vld [vmem:[%s1917_s3] sm:$0xff] }
 0x251   : > { %v1332_v21 = vpack.i.bf16 %v527_v20, %v526_v18 }
 0x253   : > { %1333 = vrot.lane.b32.xlu0 %v1332_v21, %s1443_s10  ;;  %1328 = vrot.lane.b32.xlu1 %v1332_v21, %s1441_s8 }
 0x257   : > { %1343 = vrot.lane.b32.xlu0 %v1332_v21, %s1442_s9  ;;  %1338 = vrot.lane.b32.xlu1 %v1332_v21, %s1440_s30 }
 0x25b   : > { %1353 = vrot.lane.b32.xlu0 %v1332_v21, %s1445_s12  ;;  %1348 = vrot.lane.b32.xlu1 %v1332_v21, %s1444_s11 }
 0x25f   : > { %584 = vrot.lane.b32.xlu0 %v526_v18, %s1447_s14  ;;  %1358 = vrot.lane.b32.xlu1 %v1332_v21, %s1446_s13 }
 0x263   : > { %586 = vrot.lane.b32.xlu1 %v527_v20, %s1447_s14 }
 0x2c5   : > { %v1334_v22 = vpop.permute.xlu0 %1333  ;;  %v1329_v23 = vpop.permute.xlu1 %1328 }
 0x2c6   : > { %v1336_v24 = vunpack.i.h.bf16 %v1334_v22  ;;  %v1335_v25 = vunpack.i.l.bf16 %v1334_v22  ;;  %v1331_v26 = vunpack.i.h.bf16 %v1329_v23  ;;  %v1330_v29 = vunpack.i.l.bf16 %v1329_v23 }
 0x2c8   : > { %v532_v30 = vsel %vm1929_vm4, %v1330_v29, %v1331_v26  ;;  %v540_v31 = vsel %vm1958_vm9, %v1335_v25, %v1336_v24  ;;  %v533_v32 = vsel %vm1929_vm4, %v1331_v26, %v1330_v29  ;;  %v541_v34 = vsel %vm1959_vm0, %v1336_v24, %v1335_v25  ;;  %vm1961_vm9 = vmmov %vm1960_vm8 }
 0x2c9   : > { %v1344_v35 = vpop.permute.xlu0 %1343  ;;  %v1339_v36 = vpop.permute.xlu1 %1338  ;;  %v1201_v38 = vpack.c.bf16 %v540_v31, %v532_v30  ;;  %v1204_v39 = vpack.c.bf16 %v541_v34, %v533_v32  ;;  %vm1962_vm4 = vcmp.lt.s32.totalorder %v1525_v5, 15 }
 0x2ca   : > { %v1346_v40 = vunpack.i.h.bf16 %v1344_v35  ;;  %v1345_v41 = vunpack.i.l.bf16 %v1344_v35  ;;  %v1341_v42 = vunpack.i.h.bf16 %v1339_v36  ;;  %v1340_v43 = vunpack.i.l.bf16 %v1339_v36  ;;  %vm1963_vm0 = vmmov %vm1962_vm4 }
 0x2cb   : > { %1203 = vmatprep.subr.msk.bf16.mxu1 %vm1564_vm10, %v1201_v38 }
 0x2cc   : > { %v556_v44 = vsel %vm1960_vm8, %v1345_v41, %v1346_v40  ;;  %v557_v45 = vsel %vm1961_vm9, %v1346_v40, %v1345_v41  ;;  %v548_v46 = vsel %vm1962_vm4, %v1340_v43, %v1341_v42  ;;  %v549_v47 = vsel %vm1963_vm0, %v1341_v42, %v1340_v43  ;;  %1206 = vmatpush1.bf16.msk.msra.mxu1 %vm1584_vm12, %v1204_v39 }
 0x2cd   : > { %v1207_v48 = vpack.c.bf16 %v556_v44, %v548_v46  ;;  %v1210_v50 = vpack.c.bf16 %v557_v45, %v549_v47  ;;  %v1354_v51 = vpop.permute.xlu0 %1353  ;;  %v1349_v52 = vpop.permute.xlu1 %1348  ;;  %vm1964_vm8 = vcmp.lt.s32.totalorder %v1525_v5, 127  ;;  %vm1966_vm9 = vcmp.lt.s32.totalorder %v1525_v5, 113 }
 0x2ce   : > { %v1351_v53 = vunpack.i.h.bf16 %v1349_v52  ;;  %v1350_v54 = vunpack.i.l.bf16 %v1349_v52  ;;  %v1356_v56 = vunpack.i.h.bf16 %v1354_v51  ;;  %v1355_v57 = vunpack.i.l.bf16 %v1354_v51  ;;  %vm1965_vm4 = vmmov %vm1964_vm8 }
 0x2cf   : > { %1209 = vmatprep.subr.msk.bf16.mxu1 %vm1593_vm14, %v1207_v48  ;;  %vm1967_vm0 = vmmov %vm1966_vm9 }
 0x2d0   : > { %v564_v58 = vsel %vm1964_vm8, %v1350_v54, %v1351_v53  ;;  %v565_v59 = vsel %vm1965_vm4, %v1351_v53, %v1350_v54  ;;  %1212 = vmatpush1.bf16.msk.msra.mxu1 %vm1620_vm2, %v1210_v50  ;;  %v572_v11 = vsel %vm1966_vm9, %v1355_v57, %v1356_v56  ;;  %v573_v12 = vsel %vm1967_vm0, %v1356_v56, %v1355_v57 }
 0x2d1   : > { %v1213_v60 = vpack.c.bf16 %v565_v59, %v527_v20  ;;  %v1216_v63 = vpack.c.bf16 %v564_v58, %v526_v18  ;;  %v1359_v2 = vpop.permute.xlu1 %1358  ;;  %vm1968_vm8 = vcmp.lt.s32.totalorder %v1525_v5, 112  ;;  %v585_v17 = vpop.permute.xlu0 %584  ;;  %vm1970_vm9 = vcmp.lt.s32.totalorder %v1525_v5, 16 }
 0x2d2   : > { %v1361_v7 = vunpack.i.h.bf16 %v1359_v2  ;;  %v1360_v9 = vunpack.i.l.bf16 %v1359_v2  ;;  %vm1969_vm4 = vmmov %vm1968_vm8 }
 0x2d3   : > { %1215 = vmatprep.subr.msk.bf16.mxu1 %vm1630_vm13, %v1213_v60  ;;  %vm1971_vm0 = vmmov %vm1970_vm9 }
 0x2d4   : > { %v580_v6 = vsel %vm1968_vm8, %v1360_v9, %v1361_v7  ;;  %v581_v13 = vsel %vm1969_vm4, %v1361_v7, %v1360_v9  ;;  %1218 = vmatpush1.bf16.msk.msra.mxu1 %vm1652_vm3, %v1216_v63  ;;  %vm1972_vm8 = vcmp.lt.s32.totalorder %v1525_v5, 17 }
 0x2d5   : > { %v1219_v14 = vpack.c.bf16 %v581_v13, %v573_v12  ;;  %v1222_v15 = vpack.c.bf16 %v580_v6, %v572_v11  ;;  %v587_v16 = vpop.permute.xlu1 %586  ;;  %vm1973_vm4 = vmmov %vm1972_vm8 }
 0x2d6   : > { %v589_v18 = vsel %vm365_vm5, %v587_v16, %v585_v17  ;;  %v588_v20 = vsel %vm365_vm5, %v585_v17, %v587_v16 }
 0x2d7   : > { %1221 = vmatprep.subr.msk.bf16.mxu1 %vm1658_vm6, %v1219_v14 }
 0x2d8   : > { %1224 = vmatpush1.bf16.msk.msra.mxu1 %vm1670_vm7, %v1222_v15 }
 0x2d9   : > { %1140 = vmatprep.subr.msk.mxu1 %vm1680_vm15, %v589_v18 }
 0x2dc   : > { %1141 = vmatpush1.msk.msra.mxu1 %vm1568_vm11, %v588_v20 }
 0x2dd   : > { %1142 = vmatmul.mubr.msk.f32.vlgmr.msra.gmra.mrb[0].mxu1 %vm373_vm1, %v592_v19 }
 0x2de   : > { %880 = vmatprep.mubr.f32.mxu1 %v1448_v3 }
 0x3b0   : > { %v662_v21 = vpop.f32.mrb[0].mxu1 }
 0x3b1   : > { %v667_v22 = vmax.f32 %v662_v21, 0.0  ;;  %v664_v23 = vpop.f32.mrb[1].mxu1 }
 0x3b2   : > { %v668_v24 = vmax.f32 %v664_v23, 0.0  ;;  %v735_v23 = vld [vmem:[%s1918_s4] sm:$0xff] }
 0x3b3   : > { %v669_v25 = vadd.f32 %v667_v22, %v1505_v0 }
 0x3b4   : > { %v670_v26 = vadd.f32 %v668_v24, %v1507_v1 }
 0x3b6   : > { %v1367_v29 = vpack.i.bf16 %v670_v26, %v669_v25 }
 0x3b8   : > { %1368 = vrot.lane.b32.xlu1 %v1367_v29, %s1443_s10  ;;  %1363 = vrot.lane.b32.xlu0 %v1367_v29, %s1441_s8 }
 0x3bc   : > { %1378 = vrot.lane.b32.xlu1 %v1367_v29, %s1442_s9  ;;  %1373 = vrot.lane.b32.xlu0 %v1367_v29, %s1440_s30 }
 0x3c0   : > { %1388 = vrot.lane.b32.xlu1 %v1367_v29, %s1445_s12  ;;  %1383 = vrot.lane.b32.xlu0 %v1367_v29, %s1444_s11 }
 0x3c4   : > { %727 = vrot.lane.b32.xlu1 %v669_v25, %s1447_s14  ;;  %1393 = vrot.lane.b32.xlu0 %v1367_v29, %s1446_s13 }
 0x3c8   : > { %729 = vrot.lane.b32.xlu0 %v670_v26, %s1447_s14 }
 0x42a   : > { %v1369_v0 = vpop.permute.xlu1 %1368  ;;  %v1364_v1 = vpop.permute.xlu0 %1363 }
 0x42b   : > { %v1371_v30 = vunpack.i.h.bf16 %v1369_v0  ;;  %v1370_v31 = vunpack.i.l.bf16 %v1369_v0  ;;  %v1366_v32 = vunpack.i.h.bf16 %v1364_v1  ;;  %v1365_v34 = vunpack.i.l.bf16 %v1364_v1  ;;  %v812_v1 = vld [vmem:[%s1919_s5] sm:$0xff] }
 0x42d   : > { %v683_v35 = vsel %vm1970_vm9, %v1370_v31, %v1371_v30  ;;  %v684_v36 = vsel %vm1971_vm0, %v1371_v30, %v1370_v31  ;;  %v675_v38 = vsel %vm1972_vm8, %v1365_v34, %v1366_v32  ;;  %v676_v39 = vsel %vm1973_vm4, %v1366_v32, %v1365_v34 }
 0x42e   : > { %v1225_v40 = vpack.c.bf16 %v683_v35, %v675_v38  ;;  %v1228_v41 = vpack.c.bf16 %v684_v36, %v676_v39  ;;  %v1379_v42 = vpop.permute.xlu1 %1378  ;;  %v1374_v43 = vpop.permute.xlu0 %1373  ;;  %vm1974_vm9 = vcmp.lt.s32.totalorder %v1525_v5, 1  ;;  %vm1976_vm8 = vcmp.lt.s32.totalorder %v1525_v5, 15 }
 0x42f   : > { %v1381_v44 = vunpack.i.h.bf16 %v1379_v42  ;;  %v1380_v45 = vunpack.i.l.bf16 %v1379_v42  ;;  %v1376_v46 = vunpack.i.h.bf16 %v1374_v43  ;;  %v1375_v47 = vunpack.i.l.bf16 %v1374_v43  ;;  %vm1975_vm0 = vmmov %vm1974_vm9 }
 0x430   : > { %1227 = vmatprep.subr.msk.bf16.mxu0 %vm1564_vm10, %v1225_v40  ;;  %vm1977_vm4 = vmmov %vm1976_vm8 }
 0x431   : > { %v699_v48 = vsel %vm1974_vm9, %v1380_v45, %v1381_v44  ;;  %v700_v50 = vsel %vm1975_vm0, %v1381_v44, %v1380_v45  ;;  %v691_v51 = vsel %vm1976_vm8, %v1375_v47, %v1376_v46  ;;  %v692_v52 = vsel %vm1977_vm4, %v1376_v46, %v1375_v47  ;;  %1230 = vmatpush1.bf16.msk.msra.mxu0 %vm1584_vm12, %v1228_v41 }
 0x432   : > { %v1231_v53 = vpack.c.bf16 %v699_v48, %v691_v51  ;;  %v1234_v54 = vpack.c.bf16 %v700_v50, %v692_v52  ;;  %v1389_v56 = vpop.permute.xlu1 %1388  ;;  %v1384_v57 = vpop.permute.xlu0 %1383  ;;  %vm1978_vm9 = vcmp.lt.s32.totalorder %v1525_v5, 127  ;;  %vm1980_vm8 = vcmp.lt.s32.totalorder %v1525_v5, 113 }
 0x433   : > { %v1386_v58 = vunpack.i.h.bf16 %v1384_v57  ;;  %v1385_v59 = vunpack.i.l.bf16 %v1384_v57  ;;  %v1391_v60 = vunpack.i.h.bf16 %v1389_v56  ;;  %v1390_v63 = vunpack.i.l.bf16 %v1389_v56  ;;  %vm1979_vm0 = vmmov %vm1978_vm9 }
 0x434   : > { %1233 = vmatprep.subr.msk.bf16.mxu0 %vm1593_vm14, %v1231_v53  ;;  %vm1981_vm4 = vmmov %vm1980_vm8 }
 0x435   : > { %v707_v2 = vsel %vm1978_vm9, %v1385_v59, %v1386_v58  ;;  %v708_v7 = vsel %vm1979_vm0, %v1386_v58, %v1385_v59  ;;  %1236 = vmatpush1.bf16.msk.msra.mxu0 %vm1620_vm2, %v1234_v54  ;;  %v715_v14 = vsel %vm1980_vm8, %v1390_v63, %v1391_v60  ;;  %v716_v15 = vsel %vm1981_vm4, %v1391_v60, %v1390_v63 }
 0x436   : > { %v1237_v9 = vpack.c.bf16 %v708_v7, %v670_v26  ;;  %v1240_v11 = vpack.c.bf16 %v707_v2, %v669_v25  ;;  %v1394_v12 = vpop.permute.xlu0 %1393  ;;  %vm1982_vm9 = vcmp.lt.s32.totalorder %v1525_v5, 112  ;;  %v728_v21 = vpop.permute.xlu1 %727  ;;  %vm1984_vm8 = vcmask 64512  }
 0x437   : > { %v1396_v6 = vunpack.i.h.bf16 %v1394_v12  ;;  %v1395_v13 = vunpack.i.l.bf16 %v1394_v12  ;;  %vm1983_vm0 = vmmov %vm1982_vm9  ;;  %vm1985_vm4 = vcmp.lt.s32.totalorder %v1525_v5, 16 }
 0x438   : > { %1239 = vmatprep.subr.msk.bf16.mxu0 %vm1630_vm13, %v1237_v9 }
 0x439   : > { %v723_v16 = vsel %vm1982_vm9, %v1395_v13, %v1396_v6  ;;  %v724_v17 = vsel %vm1983_vm0, %v1396_v6, %v1395_v13  ;;  %1242 = vmatpush1.bf16.msk.msra.mxu0 %vm1652_vm3, %v1240_v11  ;;  %vm1986_vm9 = vmmov %vm1985_vm4  ;;  %vm1987_vm0 = vcmp.lt.s32.totalorder %v1525_v5, 17 }
 0x43a   : > { %v1243_v18 = vpack.c.bf16 %v724_v17, %v716_v15  ;;  %v1246_v19 = vpack.c.bf16 %v723_v16, %v715_v14  ;;  %v730_v20 = vpop.permute.xlu0 %729 }
 0x43b   : > { %v732_v22 = vsel %vm365_vm5, %v730_v20, %v728_v21  ;;  %v731_v24 = vsel %vm365_vm5, %v728_v21, %v730_v20 }
 0x43c   : > { %1245 = vmatprep.subr.msk.bf16.mxu0 %vm1658_vm6, %v1243_v18 }
 0x43d   : > { %1248 = vmatpush1.bf16.msk.msra.mxu0 %vm1670_vm7, %v1246_v19 }
 0x43e   : > { %1155 = vmatprep.subr.msk.mxu0 %vm1680_vm15, %v732_v22 }
 0x441   : > { %1156 = vmatpush1.msk.msra.mxu0 %vm1568_vm11, %v731_v24 }
 0x442   : > { %1157 = vmatmul.mubr.msk.f32.vlgmr.msra.gmra.mrb[4].mxu0 %vm373_vm1, %v735_v23 }
 0x515   : > { %v805_v25 = vpop.f32.mrb[4].mxu0 }
 0x516   : > { %v807_v26 = vpop.f32.mrb[5].mxu0  ;;  %v810_v0 = vmax.f32 %v805_v25, 0.0  ;;  %v1032_v25 = vunpack.c.l.s4 %v1450_v62 }
 0x517   : > { %v811_v29 = vmax.f32 %v807_v26, 0.0 }
 0x518   : > { %v1033_v26 = vunpack.c.0.s8 %v1032_v25 }
 0x519   : > { %816 = vmatprep.subr.mxu1 %v811_v29 }
 0x51a   : > { %817 = vmatpush1.msra.mxu1 %v810_v0  ;;  %v1036_v10 = vsub.s32 %v1033_v26, %v1035_v8 }
 0x51b   : > { %1158 = vmatmul.mubr.msk.f32.vlgmr.msra.gmra.mrb[2].mxu1 %vm1984_vm8, %v812_v1  ;;  %vm1988_vm8 = vmmov %vm1987_vm0 }
 0x51c   : > { %1021 = vmatprep.mubr.f32.mxu1 %v1448_v3 }
 0x5ee   : > { %v882_v30 = vpop.f32.mrb[2].mxu1 }
 0x5ef   : > { %v887_v31 = vmax.f32 %v882_v30, 0.0  ;;  %v884_v32 = vpop.f32.mrb[3].mxu1 }
 0x5f0   : > { %v888_v34 = vmax.f32 %v884_v32, 0.0 }
 0x5f2   : > { %v1402_v35 = vpack.i.bf16 %v888_v34, %v887_v31 }
 0x5f4   : > { %1403 = vrot.lane.b32.xlu0 %v1402_v35, %s1443_s10  ;;  %1398 = vrot.lane.b32.xlu1 %v1402_v35, %s1441_s8 }
 0x5f8   : > { %1413 = vrot.lane.b32.xlu0 %v1402_v35, %s1442_s9  ;;  %1408 = vrot.lane.b32.xlu1 %v1402_v35, %s1440_s30  ;;  %s276_s9 = scalar_lea.vmem %s1921_s7, %s1111_s29 }
 0x5fc   : > { %1423 = vrot.lane.b32.xlu0 %v1402_v35, %s1445_s12  ;;  %1418 = vrot.lane.b32.xlu1 %v1402_v35, %s1444_s11 }
 0x600   : > { %945 = vrot.lane.b32.xlu0 %v887_v31, %s1447_s14  ;;  %1428 = vrot.lane.b32.xlu1 %v1402_v35, %s1446_s13 }
 0x604   : > { %947 = vrot.lane.b32.xlu1 %v888_v34, %s1447_s14 }
 0x666   : > { %v1404_v3 = vpop.permute.xlu0 %1403  ;;  %v1399_v36 = vpop.permute.xlu1 %1398 }
 0x667   : > { %v1406_v38 = vunpack.i.h.bf16 %v1404_v3  ;;  %v1405_v39 = vunpack.i.l.bf16 %v1404_v3  ;;  %v1401_v40 = vunpack.i.h.bf16 %v1399_v36  ;;  %v1400_v41 = vunpack.i.l.bf16 %v1399_v36 }
 0x669   : > { %v901_v42 = vsel %vm1985_vm4, %v1405_v39, %v1406_v38  ;;  %v902_v43 = vsel %vm1986_vm9, %v1406_v38, %v1405_v39  ;;  %v893_v44 = vsel %vm1987_vm0, %v1400_v41, %v1401_v40  ;;  %v894_v45 = vsel %vm1988_vm8, %v1401_v40, %v1400_v41 }
 0x66a   : > { %v1249_v46 = vpack.c.bf16 %v901_v42, %v893_v44  ;;  %v1252_v47 = vpack.c.bf16 %v902_v43, %v894_v45  ;;  %v1414_v48 = vpop.permute.xlu0 %1413  ;;  %v1409_v50 = vpop.permute.xlu1 %1408  ;;  %vm1989_vm4 = vcmp.lt.s32.totalorder %v1525_v5, 1  ;;  %vm1991_vm0 = vcmp.lt.s32.totalorder %v1525_v5, 15 }
 0x66b   : > { %v1416_v51 = vunpack.i.h.bf16 %v1414_v48  ;;  %v1415_v52 = vunpack.i.l.bf16 %v1414_v48  ;;  %v1411_v53 = vunpack.i.h.bf16 %v1409_v50  ;;  %v1410_v54 = vunpack.i.l.bf16 %v1409_v50  ;;  %vm1990_vm9 = vmmov %vm1989_vm4 }
 0x66c   : > { %1251 = vmatprep.subr.msk.bf16.mxu1 %vm1564_vm10, %v1249_v46  ;;  %vm1992_vm8 = vmmov %vm1991_vm0  ;;  %vm1993_vm10 = vcmp.lt.s32.totalorder %v1525_v5, 127 }
 0x66d   : > { %v917_v56 = vsel %vm1989_vm4, %v1415_v52, %v1416_v51  ;;  %v918_v57 = vsel %vm1990_vm9, %v1416_v51, %v1415_v52  ;;  %v909_v58 = vsel %vm1991_vm0, %v1410_v54, %v1411_v53  ;;  %v910_v59 = vsel %vm1992_vm8, %v1411_v53, %v1410_v54  ;;  %1254 = vmatpush1.bf16.msk.msra.mxu1 %vm1584_vm12, %v1252_v47  ;;  %vm1994_vm4 = vmmov %vm1993_vm10 }
 0x66e   : > { %v1255_v60 = vpack.c.bf16 %v917_v56, %v909_v58  ;;  %v1258_v63 = vpack.c.bf16 %v918_v57, %v910_v59  ;;  %v1424_v2 = vpop.permute.xlu0 %1423  ;;  %v1419_v27 = vpop.permute.xlu1 %1418  ;;  %vm1995_vm12 = vcmp.lt.s32.totalorder %v1525_v5, 113  ;;  %vm1997_vm9 = vcmp.lt.s32.totalorder %v1525_v5, 112 }
 0x66f   : > { %v1421_v7 = vunpack.i.h.bf16 %v1419_v27  ;;  %v1420_v9 = vunpack.i.l.bf16 %v1419_v27  ;;  %v1426_v11 = vunpack.i.h.bf16 %v1424_v2  ;;  %v1425_v12 = vunpack.i.l.bf16 %v1424_v2  ;;  %vm1998_vm0 = vmmov %vm1997_vm9 }
 0x670   : > { %1257 = vmatprep.subr.msk.bf16.mxu1 %vm1593_vm14, %v1255_v60  ;;  %vm1996_vm14 = vmmov %vm1995_vm12 }
 0x671   : > { %v925_v6 = vsel %vm1993_vm10, %v1420_v9, %v1421_v7  ;;  %v926_v13 = vsel %vm1994_vm4, %v1421_v7, %v1420_v9  ;;  %1260 = vmatpush1.bf16.msk.msra.mxu1 %vm1620_vm2, %v1258_v63  ;;  %v933_v37 = vsel %vm1995_vm12, %v1425_v12, %v1426_v11  ;;  %v934_v18 = vsel %vm1996_vm14, %v1426_v11, %v1425_v12 }
 0x672   : > { %v1261_v33 = vpack.c.bf16 %v926_v13, %v888_v34  ;;  %v1264_v14 = vpack.c.bf16 %v925_v6, %v887_v31  ;;  %v1429_v15 = vpop.permute.xlu1 %1428  ;;  %v946_v55 = vpop.permute.xlu0 %945  ;;  %vm1048_vm2 = vcmp.lt.s32.totalorder %v279_v4, 256 }
 0x673   : > { %v1431_v16 = vunpack.i.h.bf16 %v1429_v15  ;;  %v1430_v17 = vunpack.i.l.bf16 %v1429_v15 }
 0x674   : > { %1263 = vmatprep.subr.msk.bf16.mxu1 %vm1630_vm13, %v1261_v33 }
 0x675   : > { %v941_v19 = vsel %vm1997_vm9, %v1430_v17, %v1431_v16  ;;  %v942_v49 = vsel %vm1998_vm0, %v1431_v16, %v1430_v17  ;;  %1266 = vmatpush1.bf16.msk.msra.mxu1 %vm1652_vm3, %v1264_v14 }
 0x676   : > { %v1267_v20 = vpack.c.bf16 %v942_v49, %v934_v18  ;;  %v1270_v21 = vpack.c.bf16 %v941_v19, %v933_v37  ;;  %v948_v22 = vpop.permute.xlu1 %947 }
 0x677   : > { %v950_v23 = vsel %vm365_vm5, %v948_v22, %v946_v55  ;;  %v949_v24 = vsel %vm365_vm5, %v946_v55, %v948_v22 }
 0x678   : > { %1269 = vmatprep.subr.msk.bf16.mxu1 %vm1658_vm6, %v1267_v20 }
 0x679   : > { %1272 = vmatpush1.bf16.msk.msra.mxu1 %vm1670_vm7, %v1270_v21 }
 0x67a   : > { %1171 = vmatprep.subr.msk.mxu1 %vm1680_vm15, %v950_v23 }
 0x67d   : > { %1172 = vmatpush1.msk.msra.mxu1 %vm1568_vm11, %v949_v24 }
 0x67e   : > { %1173 = vmatmul.mubr.msk.f32.vlgmr.msra.gmra.mrb[4].mxu1 %vm373_vm1, %v953_v61 }
 0x751   : > { %v1023_v29 = vpop.f32.mrb[4].mxu1 }
 0x752   : > { %v1025_v0 = vpop.f32.mrb[5].mxu1 }
 0x753   : > { %v1030_v1 = vcombine.low %v1023_v29, %v1025_v0 }
 0x755   : > { %v1037_v30 = vrot.slane %v1030_v1, %v1036_v10 }
 0x757   : > { %v1044_v5 = vrot.slane %v1037_v30, %v1036_v10 }
 0x759   : > { %1050 = vst.msk [vmem:[%s276_s9] sm:$0x3] %vm1048_vm2, %v1044_v5 }
 0x75a PF: > { %s17_s24 = sadd.s32 1, %s1438_s24  }
 0x75b   : > { %p14_p4 = scmp.ge.s32.totalorder %s17_s24, 4  }
 0x75d   :  { %16 = sbr.rel (!%p14_p4) target bundleno = 1 (0x1), region = 78 }

</bundles_post_ra>
